<compile_context>
chip_gen: v6e
topology: v6e:2x2x1
jax: 0.10.0
libtpu: 0.0.40
codegen_flags: <defaults>
</compile_context>

<pallas_src>
import jax
import jax.numpy as jnp
from jax.experimental import pallas as pl
from jax.experimental.pallas import tpu as pltpu

_LANES = 128


def _round_up(x, m):
    return ((x + m - 1) // m) * m


def _layer_mode(din, dout):
    """How a Linear(din -> dout) layer is computed inside the kernel."""
    if din <= 8:
        return "fma"      # skinny-K: unrolled outer-product FMAs on the VPU
    if dout == 1:
        return "reduce"   # N=1: broadcast multiply + sublane reduce
    return "dot"          # wide: MXU matmul, N = tile_b lanes


def _make_mlp_kernel(layer_dims):
    """layer_dims: static tuple of (din, dout) per layer."""
    num_layers = len(layer_dims)

    def kernel(*refs):
        # refs = (x_ref, w0_ref, b0_ref, ..., wL_ref, bL_ref, o_ref)
        x_ref, o_ref = refs[0], refs[-1]
        wb_refs = refs[1:-1]

        h = x_ref[0]                         # (din0, tile_b): batch in lanes
        for li, (din, dout) in enumerate(layer_dims):
            w = wb_refs[2 * li][...]
            b = wb_refs[2 * li + 1][...]     # (dout, 1)
            mode = _layer_mode(din, dout)
            if mode == "fma":
                # w: (dout, din).  din unrolled outer-product FMAs on the VPU.
                acc = b
                for k in range(din):
                    acc = acc + w[:, k:k + 1] * h[k:k + 1, :]
                h = acc
            elif mode == "reduce":
                # w: (din, 1).  Elementwise multiply + reduce over sublanes.
                h = jnp.sum(h * w, axis=0, keepdims=True) + b
            else:
                # w: (dout, din).  MXU matmul with f32 accumulation, N = tile_b.
                h = jnp.dot(w, h, preferred_element_type=jnp.float32) + b
            if li < num_layers - 1:
                h = jnp.maximum(h, 0.0)

        # h: (dout_last, tile_b) -- already packed & lane dense; 4 B/row writeback.
        o_ref[...] = h[None].astype(o_ref.dtype)

    return kernel


def _choose_tiling(B):
    """Returns (tile_b, n_steps); b_pad = tile_b * n_steps >= B."""
    if B <= 256:
        return _round_up(B, _LANES), 1       # single fat grid step
    target = 2048                            # amortize ~0.35us/step pipeline overhead
    n_steps = max(2, pl.cdiv(B, target))     # >=2 steps so both v7x TCs get work
    tile_b = _round_up(pl.cdiv(B, n_steps), _LANES)   # pad waste < 128 rows/step
    n_steps = max(2, pl.cdiv(B, tile_b))
    return tile_b, n_steps


@jax.jit
def mlp_forward(x, params):
    """x: (B, din0) float32.  params: list of PyTorch-style (W (dout, din), b (dout,))."""
    x = x.astype(jnp.float32)
    B, din0 = x.shape
    layer_dims = tuple((int(w.shape[1]), int(w.shape[0])) for w, _ in params)
    dout_last = layer_dims[-1][1]

    tile_b, n_steps = _choose_tiling(B)
    b_pad = tile_b * n_steps

    # Lay the batch out along lanes: (n_steps, din0, tile_b).  Cheap one-pass XLA
    # transpose of a (B, 2) array; keeps the kernel free of any relayout ops.
    x_p = jnp.pad(x, ((0, b_pad - B), (0, 0)))
    x_t = x_p.reshape(n_steps, tile_b, din0).transpose(0, 2, 1)

    flat_params = []
    wb_specs = []
    flops = 0
    param_bytes = 0
    for (w, b), (din, dout) in zip(params, layer_dims):
        w = w.astype(jnp.float32)
        b = b.astype(jnp.float32)
        if _layer_mode(din, dout) == "reduce":
            w_k = w.T                       # (din, 1)
        else:
            w_k = w                         # (dout, din)
        b_k = b.reshape(dout, 1)
        flat_params += [w_k, b_k]
        # Weights/biases are tiny and constant across the grid: replicate them.
        wb_specs += [pl.BlockSpec(w_k.shape, lambda i: (0, 0)),
                     pl.BlockSpec(b_k.shape, lambda i: (0, 0))]
        flops += 2 * b_pad * din * dout
        param_bytes += (w_k.size + b_k.size) * 4

    in_specs = [pl.BlockSpec((1, din0, tile_b), lambda i: (i, 0, 0))] + wb_specs
    out_spec = pl.BlockSpec((1, dout_last, tile_b), lambda i: (i, 0, 0))

    # Honest estimate: padded batch, true packed output width.
    cost = pl.CostEstimate(
        flops=flops,
        transcendentals=0,
        bytes_accessed=x_t.size * 4 + param_bytes + b_pad * dout_last * 4,
    )

    out = pl.pallas_call(
        _make_mlp_kernel(layer_dims),
        out_shape=jax.ShapeDtypeStruct((n_steps, dout_last, tile_b), jnp.float32),
        grid_spec=pltpu.PrefetchScalarGridSpec(
            num_scalar_prefetch=0,
            grid=(n_steps,),
            in_specs=in_specs,
            out_specs=out_spec,
        ),
        compiler_params=pltpu.CompilerParams(
            dimension_semantics=("parallel",),
        ),
        cost_estimate=cost,
    )(x_t, *flat_params)

    # (n_steps, dout, tile_b) -> (b_pad, dout) -> (B, dout)
    return out.transpose(0, 2, 1).reshape(b_pad, dout_last)[:B]


def init_params(key, hidden_sizes):
    """Matches the module: Linear(2->h0), ..., Linear(h_last->1), PyTorch layout & init."""
    dims = [2] + list(hidden_sizes) + [1]
    params = []
    for din, dout in zip(dims[:-1], dims[1:]):
        key, kw, kb = jax.random.split(key, 3)
        bound = 1.0 / jnp.sqrt(din)
        w = jax.random.uniform(kw, (dout, din), jnp.float32, -bound, bound)
        b = jax.random.uniform(kb, (dout,), jnp.float32, -bound, bound)
        params.append((w, b))
    return params


def reference_forward(x, params):
    h = x
    for (w, b) in params[:-1]:
        h = jnp.maximum(h @ w.T + b, 0.0)
    w, b = params[-1]
    return h @ w.T + b


if __name__ == "__main__":
    key = jax.random.PRNGKey(0)
    hidden_sizes = [32, 32]   # Linear(2,32) -> ReLU -> Linear(32,32) -> ReLU -> Linear(32,1)
    kp, kx_small, kx_big = jax.random.split(key, 3)
    params = init_params(kp, hidden_sizes)

    # Small batch: exercises the single-step path.
    x_small = jax.random.normal(kx_small, (16, 2), jnp.float32)
    out_small = mlp_forward(x_small, params)
    jax.block_until_ready(out_small)
    ref_small = reference_forward(x_small, params)
    assert out_small.shape == (16, 1)
    assert jnp.allclose(out_small, ref_small, atol=1e-4, rtol=1e-4)

    # Larger batch: exercises the multi-step packed/padded path (2 x 1280-row tiles).
    x_big = jax.random.normal(kx_big, (2500, 2), jnp.float32)
    out_big = mlp_forward(x_big, params)
    jax.block_until_ready(out_big)
    ref_big = reference_forward(x_big, params)
    assert out_big.shape == (2500, 1)
    assert jnp.allclose(out_big, ref_big, atol=1e-4, rtol=1e-4)

    print("KERNEL_OK")
</pallas_src>

<mosaic_0001>
module attributes {stable_mosaic.version = 11 : i64} {
  func.func @kernel(%arg0: i32, %arg1: memref<1x2x128xf32, #tpu.memory_space<vmem>>, %arg2: memref<32x2xf32, #tpu.memory_space<vmem>>, %arg3: memref<32x1xf32, #tpu.memory_space<vmem>>, %arg4: memref<32x32xf32, #tpu.memory_space<vmem>>, %arg5: memref<32x1xf32, #tpu.memory_space<vmem>>, %arg6: memref<32x1xf32, #tpu.memory_space<vmem>>, %arg7: memref<1x1xf32, #tpu.memory_space<vmem>>, %arg8: memref<1x1x128xf32, #tpu.memory_space<vmem>>) attributes {dimension_semantics = [#tpu.dimension_semantics<parallel>], iteration_bounds = array<i64: 1>, scalar_prefetch = 0 : i64, scratch_operands = 0 : i64, tpu.core_type = #tpu.core_type<tc>, window_params = [{transform_indices = @transform_0, window_bounds = array<i64: 1, 2, 128>}, {pipeline_mode = #tpu.pipeline_mode<synchronous>, transform_indices = @transform_1, window_bounds = array<i64: 32, 2>}, {pipeline_mode = #tpu.pipeline_mode<synchronous>, transform_indices = @transform_2, window_bounds = array<i64: 32, 1>}, {pipeline_mode = #tpu.pipeline_mode<synchronous>, transform_indices = @transform_3, window_bounds = array<i64: 32, 32>}, {pipeline_mode = #tpu.pipeline_mode<synchronous>, transform_indices = @transform_4, window_bounds = array<i64: 32, 1>}, {pipeline_mode = #tpu.pipeline_mode<synchronous>, transform_indices = @transform_5, window_bounds = array<i64: 32, 1>}, {pipeline_mode = #tpu.pipeline_mode<synchronous>, transform_indices = @transform_6, window_bounds = array<i64: 1, 1>}, {transform_indices = @transform_7, window_bounds = array<i64: 1, 1, 128>}]} {
    %c0 = arith.constant 0 : index
    %c0_0 = arith.constant 0 : index
    %c0_1 = arith.constant 0 : index
    %0 = vector.load %arg1[%c0, %c0_0, %c0_1] : memref<1x2x128xf32, #tpu.memory_space<vmem>>, vector<1x2x128xf32>
    %1 = vector.shape_cast %0 : vector<1x2x128xf32> to vector<2x128xf32>
    %c0_2 = arith.constant 0 : index
    %c0_3 = arith.constant 0 : index
    %2 = vector.load %arg2[%c0_2, %c0_3] : memref<32x2xf32, #tpu.memory_space<vmem>>, vector<32x2xf32>
    %c0_4 = arith.constant 0 : index
    %c0_5 = arith.constant 0 : index
    %3 = vector.load %arg3[%c0_4, %c0_5] : memref<32x1xf32, #tpu.memory_space<vmem>>, vector<32x1xf32>
    %4 = vector.extract_strided_slice %2 {offsets = [0, 0], sizes = [32, 1], strides = [1, 1]} : vector<32x2xf32> to vector<32x1xf32>
    %5 = vector.extract_strided_slice %1 {offsets = [0, 0], sizes = [1, 128], strides = [1, 1]} : vector<2x128xf32> to vector<1x128xf32>
    %6 = vector.broadcast %4 : vector<32x1xf32> to vector<32x128xf32>
    %7 = vector.broadcast %5 : vector<1x128xf32> to vector<32x128xf32>
    %8 = arith.mulf %6, %7 : vector<32x128xf32>
    %9 = vector.broadcast %3 : vector<32x1xf32> to vector<32x128xf32>
    %10 = arith.addf %9, %8 : vector<32x128xf32>
    %11 = vector.extract_strided_slice %2 {offsets = [0, 1], sizes = [32, 1], strides = [1, 1]} : vector<32x2xf32> to vector<32x1xf32>
    %12 = vector.extract_strided_slice %1 {offsets = [1, 0], sizes = [1, 128], strides = [1, 1]} : vector<2x128xf32> to vector<1x128xf32>
    %13 = vector.broadcast %11 : vector<32x1xf32> to vector<32x128xf32>
    %14 = vector.broadcast %12 : vector<1x128xf32> to vector<32x128xf32>
    %15 = arith.mulf %13, %14 : vector<32x128xf32>
    %16 = arith.addf %10, %15 : vector<32x128xf32>
    %cst = arith.constant 0.000000e+00 : f32
    %17 = vector.broadcast %cst : f32 to vector<32x128xf32>
    %18 = arith.maximumf %16, %17 : vector<32x128xf32>
    %c0_6 = arith.constant 0 : index
    %c0_7 = arith.constant 0 : index
    %19 = vector.load %arg4[%c0_6, %c0_7] : memref<32x32xf32, #tpu.memory_space<vmem>>, vector<32x32xf32>
    %c0_8 = arith.constant 0 : index
    %c0_9 = arith.constant 0 : index
    %20 = vector.load %arg5[%c0_8, %c0_9] : memref<32x1xf32, #tpu.memory_space<vmem>>, vector<32x1xf32>
    %cst_10 = arith.constant dense<0.000000e+00> : vector<32x128xf32>
    %21 = tpu.matmul %19, %18, %cst_10 {dimension_numbers = #tpu.dot_dimension_numbers<[1], [0], [0], [1], [0, 0, 1, 1], [], []>} : vector<32x32xf32>, vector<32x128xf32>, vector<32x128xf32> -> vector<32x128xf32>
    %22 = vector.broadcast %20 : vector<32x1xf32> to vector<32x128xf32>
    %23 = arith.addf %21, %22 : vector<32x128xf32>
    %cst_11 = arith.constant 0.000000e+00 : f32
    %24 = vector.broadcast %cst_11 : f32 to vector<32x128xf32>
    %25 = arith.maximumf %23, %24 : vector<32x128xf32>
    %c0_12 = arith.constant 0 : index
    %c0_13 = arith.constant 0 : index
    %26 = vector.load %arg6[%c0_12, %c0_13] : memref<32x1xf32, #tpu.memory_space<vmem>>, vector<32x1xf32>
    %c0_14 = arith.constant 0 : index
    %c0_15 = arith.constant 0 : index
    %27 = vector.load %arg7[%c0_14, %c0_15] : memref<1x1xf32, #tpu.memory_space<vmem>>, vector<1x1xf32>
    %28 = vector.broadcast %26 : vector<32x1xf32> to vector<32x128xf32>
    %29 = arith.mulf %25, %28 : vector<32x128xf32>
    %cst_16 = arith.constant dense<0.000000e+00> : vector<128xf32>
    %30 = vector.multi_reduction <add>, %29, %cst_16 [0] : vector<32x128xf32> to vector<128xf32>
    %31 = vector.shape_cast %30 : vector<128xf32> to vector<1x128xf32>
    %32 = vector.broadcast %27 : vector<1x1xf32> to vector<1x128xf32>
    %33 = arith.addf %31, %32 : vector<1x128xf32>
    %34 = vector.shape_cast %33 : vector<1x128xf32> to vector<1x1x128xf32>
    %c0_17 = arith.constant 0 : index
    %c0_18 = arith.constant 0 : index
    %c0_19 = arith.constant 0 : index
    %35 = vector.load %arg8[%c0_17, %c0_18, %c0_19] : memref<1x1x128xf32, #tpu.memory_space<vmem>>, vector<1x1x128xf32>
    tpu.vector_store %arg8[%c0_17, %c0_18, %c0_19], %34 {strides = array<i32>} : memref<1x1x128xf32, #tpu.memory_space<vmem>>, vector<1x1x128xf32>,
    return
  }
  func.func @transform_0(%arg0: i32) -> (i32, i32, i32) {
    %c0_i32 = arith.constant 0 : i32
    %c0_i32_0 = arith.constant 0 : i32
    %c0_i32_1 = arith.constant 0 : i32
    return %arg0, %c0_i32, %c0_i32_0 : i32, i32, i32
  }
  func.func @transform_1(%arg0: i32) -> (i32, i32) {
    %c0_i32 = arith.constant 0 : i32
    %c0_i32_0 = arith.constant 0 : i32
    %c0_i32_1 = arith.constant 0 : i32
    return %c0_i32, %c0_i32_0 : i32, i32
  }
  func.func @transform_2(%arg0: i32) -> (i32, i32) {
    %c0_i32 = arith.constant 0 : i32
    %c0_i32_0 = arith.constant 0 : i32
    %c0_i32_1 = arith.constant 0 : i32
    return %c0_i32, %c0_i32_0 : i32, i32
  }
  func.func @transform_3(%arg0: i32) -> (i32, i32) {
    %c0_i32 = arith.constant 0 : i32
    %c0_i32_0 = arith.constant 0 : i32
    %c0_i32_1 = arith.constant 0 : i32
    return %c0_i32, %c0_i32_0 : i32, i32
  }
  func.func @transform_4(%arg0: i32) -> (i32, i32) {
    %c0_i32 = arith.constant 0 : i32
    %c0_i32_0 = arith.constant 0 : i32
    %c0_i32_1 = arith.constant 0 : i32
    return %c0_i32, %c0_i32_0 : i32, i32
  }
  func.func @transform_5(%arg0: i32) -> (i32, i32) {
    %c0_i32 = arith.constant 0 : i32
    %c0_i32_0 = arith.constant 0 : i32
    %c0_i32_1 = arith.constant 0 : i32
    return %c0_i32, %c0_i32_0 : i32, i32
  }
  func.func @transform_6(%arg0: i32) -> (i32, i32) {
    %c0_i32 = arith.constant 0 : i32
    %c0_i32_0 = arith.constant 0 : i32
    %c0_i32_1 = arith.constant 0 : i32
    return %c0_i32, %c0_i32_0 : i32, i32
  }
  func.func @transform_7(%arg0: i32) -> (i32, i32, i32) {
    %c0_i32 = arith.constant 0 : i32
    %c0_i32_0 = arith.constant 0 : i32
    %c0_i32_1 = arith.constant 0 : i32
    return %arg0, %c0_i32, %c0_i32_0 : i32, i32, i32
  }
}

</mosaic_0001>

<bundles_post_ra>
// kernel: mlp_forward.1
= control target key start
LH: loop header
LB: loop body
LE: loop exit
PB: predicated region body
PF: predicated region fallthrough
CT: control target
= control target key end

     0   :  { %v346_v0 = vmov 0   ;;  %v347_v4 = vmov 1   ;;  %vm149_vm0 = vcmask 261120   ;;  %v57_v22 = vlaneseq  ;;  %s469_s2 = inlined_call_operand.vmem [shape: f32[32,1], index: 2, kind: input, shape index: {}]   ;;  %s470_s1 = inlined_call_operand.vmem [shape: f32[32,2], index: 1, kind: input, shape index: {}]   ;;  %s471_s4 = inlined_call_operand.vmem [shape: f32[32,1], index: 4, kind: input, shape index: {}]   ;;  %s472_s3 = inlined_call_operand.vmem [shape: f32[32,32], index: 3, kind: input, shape index: {}]   ;;  %s473_s5 = inlined_call_operand.vmem [shape: f32[32,1], index: 5, kind: input, shape index: {}]   ;;  %s474_s6 = inlined_call_operand.<no memory space> [shape: f32[1,1], index: 6, kind: input, shape index: {}]   ;;  %s475_s0 = inlined_call_operand.vmem [shape: f32[1,2,128], index: 0, kind: input, shape index: {}]   ;;  %s476_s7 = inlined_call_operand.vmem [shape: f32[1,1,128], index: 7, kind: output, shape index: {}]  }
   0x1   :  { %341 = vset.pattern.permute.xlu1 %v346_v0  ;;  %340 = vset.pattern.permute.xlu0 %v346_v0  ;;  %v36_v1 = vld [vmem:[%s469_s2 + $0x18] sm:$0xff]  ;;  %v31_v3 = vld [vmem:[%s470_s1 + $0x10] sm:$0xff]  ;;  %v30_v5 = vld [vmem:[%s470_s1 + $0x8] sm:$0xff]  ;;  %v12_v17 = vstv %s474_s6 }
   0x2   :  { %v32_v2 = vld [vmem:[%s470_s1 + $0x18] sm:$0xff]  ;;  %82 = vperm.xlu1 %341, %v36_v1   ;;  %v35_v6 = vld [vmem:[%s469_s2 + $0x10] sm:$0xff]  ;;  %v29_v7 = vld [vmem:[%s470_s1] sm:$0xff]  ;;  %13 = vst [vmem:[#allocation2] sm:$0x1] %v12_v17  ;;  %v447_v23 = vshrl.u32 %v57_v22, 7 }
   0x3   :  { %54 = vperm.xlu0 %340, %v32_v2   ;;  %v34_v8 = vld [vmem:[%s469_s2 + $0x8] sm:$0xff]  ;;  %v33_v9 = vld [vmem:[%s469_s2] sm:$0xff]  ;;  %v123_v12 = vld [vmem:[%s472_s3 + $0x10] sm:$0xff] }
   0x4   :  { %v125_v10 = vld [vmem:[%s471_s4] sm:$0xff]  ;;  %327 = vmatprep.mubr.msk.f32.mxu1 %vm149_vm0, %v123_v12  ;;  %v127_v13 = vld [vmem:[%s471_s4 + $0x10] sm:$0xff]  ;;  %v128_v14 = vld [vmem:[%s471_s4 + $0x18] sm:$0xff]  ;;  %v59_v24 = vsub.s32 0, %v447_v23  ;;  %v107_v27 = vsub.s32 1, %v447_v23 }
   0x5   :  { %v121_v11 = vld [vmem:[%s472_s3] sm:$0xff]  ;;  %v252_v15 = vld [vmem:[%s473_s5 + $0x8] sm:$0xff]  ;;  %v254_v18 = vld [vmem:[%s473_s5 + $0x18] sm:$0xff] }
   0x6   :  { %342 = vset.pattern.permute.xlu1 %v347_v4  ;;  %324 = vmatprep.mubr.msk.f32.mxu0 %vm149_vm0, %v121_v11  ;;  %v126_v16 = vld [vmem:[%s471_s4 + $0x8] sm:$0xff]  ;;  %v251_v19 = vld [vmem:[%s473_s5] sm:$0xff]  ;;  %v253_v20 = vld [vmem:[%s473_s5 + $0x10] sm:$0xff] }
   0x7   :  { %49 = vperm.xlu0 %340, %v31_v3   ;;  %102 = vperm.xlu1 %342, %v32_v2   ;;  %v28_v25 = vld [vmem:[%s475_s0] sm:$0x3]  ;;  %v122_v61 = vld [vmem:[%s472_s3 + $0x8] sm:$0xff]  ;;  %v124_v62 = vld [vmem:[%s472_s3 + $0x18] sm:$0xff] }
   0x8   :  { %v60_v26 = vrot.slane %v28_v25, %v59_v24  ;;  %v108_v31 = vrot.slane %v28_v25, %v107_v27 }
   0x9   :  { %v255_v21 = vld [vmem:[#allocation2] sm:$0x1] }
   0xb   :  { %44 = vperm.xlu0 %340, %v30_v5   ;;  %343 = vset.pattern.permute.xlu1 %v346_v0 }
   0xc   :  { %77 = vperm.xlu1 %343, %v35_v6  }
   0xf   :  { %344 = vset.pattern.permute.xlu0 %v347_v4 }
  0x10   :  { %98 = vperm.xlu0 %344, %v31_v3   ;;  %39 = vperm.xlu1 %343, %v29_v7  }
  0x14   :  { %94 = vperm.xlu0 %344, %v30_v5   ;;  %72 = vperm.xlu1 %343, %v34_v8  }
  0x18   :  { %90 = vperm.xlu0 %344, %v29_v7   ;;  %67 = vperm.xlu1 %343, %v33_v9  }
  0x1c   :  { %131 = vperm.xlu1 %343, %v125_v10   ;;  %345 = vset.pattern.permute.xlu0 %v346_v0 }
  0x1d   :  { %136 = vperm.xlu0 %345, %v126_v16  }
  0x20   :  { %141 = vperm.xlu1 %343, %v127_v13  }
  0x21   :  { %258 = vperm.xlu0 %345, %v251_v19  }
  0x24   :  { %146 = vperm.xlu1 %343, %v128_v14  }
  0x25   :  { %268 = vperm.xlu0 %345, %v253_v20  }
  0x28   :  { %263 = vperm.xlu1 %343, %v252_v15  }
  0x29   :  { %291 = vperm.xlu0 %345, %v255_v21  }
  0x2c   :  { %273 = vperm.xlu1 %343, %v254_v18  }
  0x7d   :  { %v83_v28 = vpop.permute.xlu1 %82 }
  0x7e   :  { %v55_v29 = vpop.permute.xlu0 %54 }
  0x7f   :  { %v64_v30 = vmul.f32 %v60_v26, %v55_v29 }
  0x81   :  { %v88_v34 = vadd.f32 %v83_v28, %v64_v30 }
  0x82   :  { %v50_v32 = vpop.permute.xlu0 %49  ;;  %v103_v33 = vpop.permute.xlu1 %102 }
  0x83   :  { %v112_v35 = vmul.f32 %v108_v31, %v103_v33  ;;  %v63_v40 = vmul.f32 %v60_v26, %v50_v32 }
  0x85   :  { %v116_v36 = vadd.f32 %v112_v35, %v88_v34 }
  0x86   :  { %v45_v37 = vpop.permute.xlu0 %44 }
  0x87   :  { %v120_v38 = vmax.f32 %v116_v36, 0.0  ;;  %v78_v39 = vpop.permute.xlu1 %77  ;;  %v62_v46 = vmul.f32 %v60_v26, %v45_v37 }
  0x88   :  { %v87_v42 = vadd.f32 %v78_v39, %v63_v40 }
  0x89   :  { %316 = vmatprep.subr.mxu0 %v120_v38  ;;  %330 = vmatprep.subr.mxu1 %v120_v38 }
  0x8a   :  { %317 = vmatpush3.msra.mxu0 %v120_v38  ;;  %334 = vmatpush3.msra.mxu1 %v120_v38 }
  0x8b   :  { %v99_v41 = vpop.permute.xlu0 %98  ;;  %v40_v44 = vpop.permute.xlu1 %39 }
  0x8c   :  { %v111_v43 = vmul.f32 %v108_v31, %v99_v41  ;;  %v61_v52 = vmul.f32 %v60_v26, %v40_v44 }
  0x8e   :  { %v115_v45 = vadd.f32 %v111_v43, %v87_v42 }
  0x8f   :  { %v95_v47 = vpop.permute.xlu0 %94  ;;  %v73_v50 = vpop.permute.xlu1 %72 }
  0x90   :  { %v119_v48 = vmax.f32 %v115_v45, 0.0  ;;  %v110_v49 = vmul.f32 %v108_v31, %v95_v47  ;;  %v86_v51 = vadd.f32 %v73_v50, %v62_v46 }
  0x92   :  { %318 = vmatprep.subr.mxu0 %v119_v48  ;;  %331 = vmatprep.subr.mxu1 %v119_v48  ;;  %v114_v53 = vadd.f32 %v110_v49, %v86_v51 }
  0x93   :  { %v91_v54 = vpop.permute.xlu0 %90  ;;  %319 = vmatpush3.msra.mxu0 %v119_v48  ;;  %335 = vmatpush3.msra.mxu1 %v119_v48  ;;  %v68_v56 = vpop.permute.xlu1 %67 }
  0x94   :  { %v109_v55 = vmul.f32 %v108_v31, %v91_v54  ;;  %v118_v57 = vmax.f32 %v114_v53, 0.0  ;;  %v85_v58 = vadd.f32 %v68_v56, %v61_v52 }
  0x96   :  { %v113_v59 = vadd.f32 %v109_v55, %v85_v58  ;;  %320 = vmatprep.subr.mxu0 %v118_v57  ;;  %332 = vmatprep.subr.mxu1 %v118_v57 }
  0x97   :  { %321 = vmatpush3.msra.mxu0 %v118_v57  ;;  %336 = vmatpush3.msra.mxu1 %v118_v57  ;;  %v132_v63 = vpop.permute.xlu1 %131 }
  0x98   :  { %v117_v60 = vmax.f32 %v113_v59, 0.0  ;;  %v137_v1 = vpop.permute.xlu0 %136 }
  0x9a   :  { %322 = vmatprep.subr.mxu0 %v117_v60  ;;  %333 = vmatprep.subr.mxu1 %v117_v60 }
  0x9b   :  { %323 = vmatpush3.msra.mxu0 %v117_v60  ;;  %337 = vmatpush3.msra.mxu1 %v117_v60  ;;  %v142_v0 = vpop.permute.xlu1 %141 }
  0x9c   :  { %325 = vmatmul.mubr.msk.f32.vlgmr.msra.gmra.mxu0 %vm149_vm0, %v122_v61  ;;  %328 = vmatmul.mubr.msk.f32.vlgmr.msra.gmra.mxu1 %vm149_vm0, %v124_v62  ;;  %v259_v5 = vpop.permute.xlu0 %258 }
  0x9f   :  { %v147_v2 = vpop.permute.xlu1 %146 }
  0xa0   :  { %v269_v19 = vpop.permute.xlu0 %268 }
  0xa3   :  { %v264_v13 = vpop.permute.xlu1 %263 }
  0xa4   :  { %v292_v32 = vpop.permute.xlu0 %291 }
  0xa5   :  { %v297_v34 = vrot.slane %v292_v32, %v59_v24 }
  0xa7   :  { %v274_v22 = vpop.permute.xlu1 %273 }
 0x15c   :  { %v326_v3 = vpop.f32.mrf.mxu0  ;;  %v329_v4 = vpop.f32.mrf.mxu1 }
 0x15d   :  { %v234_v6 = vadd.f32 %v326_v3, %v137_v1  ;;  %v244_v10 = vadd.f32 %v329_v4, %v147_v2 }
 0x15e   :  { %v228_v7 = vpop.f32.mrf.mxu0  ;;  %v238_v8 = vpop.f32.mrf.mxu1 }
 0x15f   :  { %v248_v9 = vmax.f32 %v234_v6, 0.0  ;;  %v229_v11 = vadd.f32 %v228_v7, %v132_v63  ;;  %v239_v12 = vadd.f32 %v238_v8, %v142_v0  ;;  %v250_v17 = vmax.f32 %v244_v10, 0.0 }
 0x161   :  { %v247_v14 = vmax.f32 %v229_v11, 0.0  ;;  %v249_v15 = vmax.f32 %v239_v12, 0.0  ;;  %v277_v16 = vmul.f32 %v264_v13, %v248_v9  ;;  %v279_v25 = vmul.f32 %v274_v22, %v250_v17 }
 0x163   :  { %v276_v18 = vmul.f32 %v259_v5, %v247_v14  ;;  %v278_v21 = vmul.f32 %v269_v19, %v249_v15 }
 0x165   :  { %v280_v20 = vadd.f32 %v277_v16, %v276_v18 }
 0x167   :  { %v281_v26 = vadd.f32 %v280_v20, %v278_v21 }
 0x169   :  { %v282_v27 = vadd.f32 %v281_v26, %v279_v25 }
 0x16b   :  { %v283_v28 = vrot.slane %v282_v27, 4 }
 0x16d   :  { %v284_v29 = vadd.f32 %v283_v28, %v282_v27 }
 0x16f   :  { %v285_v30 = vrot.slane %v284_v29, 2 }
 0x171   :  { %v286_v31 = vadd.f32 %v285_v30, %v284_v29 }
 0x173   :  { %v287_v33 = vrot.slane %v286_v31, 1 }
 0x175   :  { %v288_v35 = vadd.f32 %v287_v33, %v286_v31 }
 0x177   :  { %v298_v36 = vadd.f32 %v297_v34, %v288_v35 }
 0x179   :  { %299 = vst [vmem:[%s476_s7] sm:$0x1] %v298_v36 }

</bundles_post_ra>
